<compile_context>
chip_gen: v6e
topology: v6e:2x2x1
jax: 0.10.0
libtpu: 0.0.40
codegen_flags: <defaults>
</compile_context>

<pallas_src>
import functools

import jax
import jax.numpy as jnp
from jax.experimental import pallas as pl
from jax.experimental.pallas import tpu as pltpu


# --------------------------------------------------------------------------- #
# Kernel: one GATConv layer, one destination-row tile per grid step.
# --------------------------------------------------------------------------- #
def _gat_conv_kernel(adj_ref, hs_ref, hd_ref, w_ref, att_ref, b_ref, out_ref, *,
                     heads, f_out, is_output, exp_bf16, neg_slope=0.2):
    """refs:
      adj_ref : [T, N]  int8   adjacency row tile (dest rows of this grid step)
      hs_ref  : [N, F_in] bf16 node features, all SOURCE nodes
      hd_ref  : [T, F_in] bf16 node features, DESTINATION rows of this tile
      w_ref   : [F_in, H*F_out] bf16
      att_ref : [H*F_out, 2H]   bf16 (block-diag att_src | att_dst)
      b_ref   : [1, out_width]  f32
      out_ref : [T, out_width]  bf16 (hidden) / f32 (output layer)
    """
    # Source projection (bf16 x bf16, f32 accumulate on the MXU): [N, H*F]
    hw_src = jnp.dot(hs_ref[...], w_ref[...], preferred_element_type=jnp.float32)
    hw_src_b = hw_src.astype(jnp.bfloat16)
    # Per-source-node attention logits (first H columns of att): [N, 2H] -> [H, N]
    logit_src = jnp.dot(hw_src_b, att_ref[...], preferred_element_type=jnp.float32)
    alpha_src_t = logit_src[:, :heads].T                                   # [H, N]

    # Destination-tile projection and logits.
    hw_dst = jnp.dot(hd_ref[...], w_ref[...], preferred_element_type=jnp.float32)
    logit_dst = jnp.dot(hw_dst.astype(jnp.bfloat16), att_ref[...],
                        preferred_element_type=jnp.float32)                # [T, 2H]
    alpha_dst = logit_dst[:, heads:]                                       # [T, H]

    adj = adj_ref[...]
    neg_big = jnp.float32(-1e30)

    outs = []
    for hh in range(heads):                                                # static unroll
        # e[i, j] = LeakyReLU(alpha_dst[i] + alpha_src[j]); mask non-edges.
        e = alpha_dst[:, hh:hh + 1] + alpha_src_t[hh:hh + 1, :]            # [T, N]
        e = jnp.maximum(e, neg_slope * e)                                  # LeakyReLU
        e = jnp.where(adj != 0, e, neg_big)                                # edge mask
        # Masked softmax over source nodes j (self-loop guarantees a nonempty row).
        m = jnp.max(e, axis=-1, keepdims=True)
        s = e - m
        if exp_bf16:
            p = jnp.exp(s.astype(jnp.bfloat16)).astype(jnp.float32)
        else:
            p = jnp.exp(s)
        denom = jnp.sum(p, axis=-1, keepdims=True)
        attn = p * pl.reciprocal(denom, approx=False)                      # [T, N]
        # TODO(synk): attention-coefficient dropout (attn_drop) omitted — eval mode.
        outs.append(jnp.dot(attn.astype(jnp.bfloat16),
                            hw_src_b[:, hh * f_out:(hh + 1) * f_out],
                            preferred_element_type=jnp.float32))           # [T, F_out]

    if is_output:
        # Head-mean -> + bias -> log_softmax (exact, f32).
        acc = outs[0]
        for t in outs[1:]:
            acc = acc + t
        logits = acc * (1.0 / heads) + b_ref[...]
        mx = jnp.max(logits, axis=-1, keepdims=True)
        sh = logits - mx
        lse = jnp.log(jnp.sum(jnp.exp(sh), axis=-1, keepdims=True))
        out_ref[...] = (sh - lse).astype(out_ref.dtype)
    else:
        # Head-concat -> + bias -> ELU(alpha=1); single lane-dense store.
        hcat = jnp.concatenate(outs, axis=-1) + b_ref[...]                 # [T, H*F]
        out_ref[...] = jnp.where(
            hcat > 0, hcat, jnp.exp(jnp.minimum(hcat, 0.0)) - 1.0
        ).astype(out_ref.dtype)


# --------------------------------------------------------------------------- #
# Per-generation configuration.
# --------------------------------------------------------------------------- #
def _device_config():
    try:
        kind = jax.devices()[0].device_kind.lower()
    except Exception:
        kind = ""
    if "v5" in kind:   # 128 MiB VMEM, no bf16 EUP path, ~820 GB/s HBM
        return dict(exp_bf16=False, vmem_limit=100 * 1024 * 1024, tile_target=512)
    if "v7" in kind:   # 64 MiB VMEM per TC, 2 TCs -> smaller tile, parallel axis
        return dict(exp_bf16=True, vmem_limit=48 * 1024 * 1024, tile_target=256)
    if "v6" in kind:   # 128 MiB VMEM, bf16 EUP
        return dict(exp_bf16=True, vmem_limit=96 * 1024 * 1024, tile_target=512)
    return dict(exp_bf16=True, vmem_limit=64 * 1024 * 1024, tile_target=256)


def _pick_tile_n(n, target):
    """Largest power-of-two, multiple-of-8 divisor of n that is <= target."""
    best = n
    t = 8
    while t <= min(target, n):
        if n % t == 0:
            best = t
        t *= 2
    return best


def _layer_cost(n, f_in, heads, f_out, tile_n):
    num_tiles = n // tile_n
    hf = heads * f_out
    flops = (num_tiles * 2 * n * f_in * hf            # source projection per tile
             + 2 * n * f_in * hf                      # destination projections
             + num_tiles * 2 * n * hf * 2 * heads     # attention logits
             + heads * 2 * n * n * f_out              # attention aggregation
             + heads * 6 * n * n)                     # e / leaky / mask / softmax VPU
    transcendentals = heads * n * n
    bytes_accessed = (n * n                           # adj (int8)
                      + 2 * n * f_in * 2              # h (full + tiled, bf16)
                      + n * hf * 2                    # output
                      + f_in * hf * 2 + hf * 2 * heads * 2 + hf * 4)
    return pl.CostEstimate(flops=int(flops), transcendentals=int(transcendentals),
                           bytes_accessed=int(bytes_accessed))


# --------------------------------------------------------------------------- #
# One GATConv layer = one pallas_call with a destination-row-tiled grid.
# --------------------------------------------------------------------------- #
def _gat_conv(h, adj, w, att, b, *, heads, f_out, tile_n, is_output,
              exp_bf16, vmem_limit):
    n, f_in = h.shape
    assert n % tile_n == 0 and (tile_n % 8 == 0 or tile_n == n), \
        "tile_n must divide N and be a multiple of 8 (or equal N)"
    num_tiles = n // tile_n
    out_width = f_out if is_output else heads * f_out
    out_dtype = jnp.float32 if is_output else jnp.bfloat16

    kernel = functools.partial(_gat_conv_kernel, heads=heads, f_out=f_out,
                               is_output=is_output, exp_bf16=exp_bf16)

    return pl.pallas_call(
        kernel,
        out_shape=jax.ShapeDtypeStruct((n, out_width), out_dtype),
        grid=(num_tiles,),
        in_specs=[
            pl.BlockSpec((tile_n, n), lambda i: (i, 0)),            # adj row tile
            pl.BlockSpec((n, f_in), lambda i: (0, 0)),              # h (all sources)
            pl.BlockSpec((tile_n, f_in), lambda i: (i, 0)),         # h (dest rows)
            pl.BlockSpec((f_in, heads * f_out), lambda i: (0, 0)),  # W
            pl.BlockSpec((heads * f_out, 2 * heads), lambda i: (0, 0)),  # att
            pl.BlockSpec((1, out_width), lambda i: (0, 0)),         # bias
        ],
        out_specs=pl.BlockSpec((tile_n, out_width), lambda i: (i, 0)),
        compiler_params=pltpu.CompilerParams(
            dimension_semantics=("parallel",),     # row tiles split across TCs (v7x)
            vmem_limit_bytes=vmem_limit),
        cost_estimate=_layer_cost(n, f_in, heads, f_out, tile_n),
    )(adj, h, h, w, att, b)


def gat_net_forward(x, adj_mask, params, *, num_layers, num_heads, num_hidden,
                    num_out_heads, num_classes, tile_n=None):
    """Forward pass of the whole GAT Net (eval mode)."""
    n = x.shape[0]
    cfg = _device_config()
    if tile_n is None:
        tile_n = _pick_tile_n(n, cfg["tile_target"])

    # F.dropout(x, p=in_drop, training=False) -> identity; keep activations bf16.
    h = x.astype(jnp.bfloat16)
    for layer in range(num_layers):
        w, att, b = params[f"layer{layer}"]
        h = _gat_conv(h, adj_mask, w, att, b, heads=num_heads, f_out=num_hidden,
                      tile_n=tile_n, is_output=False,
                      exp_bf16=cfg["exp_bf16"], vmem_limit=cfg["vmem_limit"])
    w, att, b = params["out"]
    return _gat_conv(h, adj_mask, w, att, b, heads=num_out_heads,
                     f_out=num_classes, tile_n=tile_n, is_output=True,
                     exp_bf16=cfg["exp_bf16"], vmem_limit=cfg["vmem_limit"])


# --------------------------------------------------------------------------- #
# Parameter construction + pure-JAX reference.
# --------------------------------------------------------------------------- #
def _block_diag_att(att):
    """[H, F_out] attention vector -> block-diagonal [H*F_out, H] matrix so that
    xw @ result gives per-head attention logits without in-kernel reshapes."""
    h, f = att.shape
    eye = jnp.eye(h, dtype=att.dtype)
    return (att[:, :, None] * eye[:, None, :]).reshape(h * f, h)


def _init_gat_params(key, f_in, f_out, heads):
    k1, k2, k3 = jax.random.split(key, 3)
    w = (jax.random.normal(k1, (f_in, heads * f_out), jnp.float32)
         / jnp.sqrt(jnp.float32(f_in))).astype(jnp.bfloat16)
    att_src = 0.1 * jax.random.normal(k2, (heads, f_out), jnp.float32)
    att_dst = 0.1 * jax.random.normal(k3, (heads, f_out), jnp.float32)
    att_cat = jnp.concatenate(
        [_block_diag_att(att_src), _block_diag_att(att_dst)],
        axis=1).astype(jnp.bfloat16)                               # [H*F, 2H] bf16
    return w, att_cat


def _gat_reference(x, adj, params, *, num_layers, num_heads, num_hidden,
                   num_out_heads, num_classes, neg_slope=0.2):
    """f32 pure-JAX reference with identical parameterization."""
    def conv(h, w, att, b, heads, f_out, reduce_mean):
        hw = h @ w.astype(jnp.float32)
        logit = hw @ att.astype(jnp.float32)
        a_src, a_dst = logit[:, :heads], logit[:, heads:]
        outs = []
        for hh in range(heads):
            e = a_dst[:, hh:hh + 1] + a_src[:, hh][None, :]
            e = jnp.where(e > 0, e, neg_slope * e)
            e = jnp.where(adj != 0, e, -1e30)
            p = jax.nn.softmax(e, axis=-1)
            outs.append(p @ hw[:, hh * f_out:(hh + 1) * f_out])
        if reduce_mean:
            return sum(outs) / heads + b
        return jnp.concatenate(outs, axis=-1) + b

    h = x
    for i in range(num_layers):
        w, att, b = params[f"layer{i}"]
        h = jax.nn.elu(conv(h, w, att, b, num_heads, num_hidden, False))
    w, att, b = params["out"]
    return jax.nn.log_softmax(conv(h, w, att, b, num_out_heads, num_classes, True),
                              axis=-1)


if __name__ == "__main__":
    key = jax.random.PRNGKey(0)
    keys = jax.random.split(key, 16)

    # Small config consistent with the module's __init__.
    N = 16                 # number of graph nodes
    num_features = 32
    num_hidden = 8
    num_heads = 4
    num_out_heads = 1
    num_classes = 8
    num_layers = 2

    x = jax.random.normal(keys[0], (N, num_features), jnp.float32)
    # int8 adjacency mask (adj[i, j] = 1 <=> edge j -> i) plus self loops.
    adj_rand = (jax.random.uniform(keys[1], (N, N)) < 0.3).astype(jnp.int8)
    adj = jnp.maximum(adj_rand, jnp.eye(N, dtype=jnp.int8))

    params = {}
    f_in = num_features
    for i in range(num_layers):
        w, att_cat = _init_gat_params(keys[2 + i], f_in, num_hidden, num_heads)
        bias = 0.05 * jax.random.normal(keys[8 + i],
                                        (1, num_heads * num_hidden), jnp.float32)
        params[f"layer{i}"] = (w, att_cat, bias)
        f_in = num_heads * num_hidden
    w, att_cat = _init_gat_params(keys[10], f_in, num_classes, num_out_heads)
    params["out"] = (w, att_cat,
                     0.05 * jax.random.normal(keys[11], (1, num_classes), jnp.float32))

    # tile_n=8 -> 2-step row-tiled grid even at this toy size.
    out = gat_net_forward(x, adj, params, num_layers=num_layers,
                          num_heads=num_heads, num_hidden=num_hidden,
                          num_out_heads=num_out_heads, num_classes=num_classes,
                          tile_n=8)
    out = jax.block_until_ready(out)

    assert out.shape == (N, num_classes)
    assert bool(jnp.all(jnp.isfinite(out)))
    # log_softmax rows should sum to ~1 in prob space.
    assert bool(jnp.allclose(jnp.sum(jnp.exp(out), axis=1), 1.0, atol=1e-4))
    # Loose parity against an f32 pure-JAX reference (bf16 activations/exp inside
    # the kernel give ~1e-2-level differences).
    ref = _gat_reference(x, adj, params, num_layers=num_layers,
                         num_heads=num_heads, num_hidden=num_hidden,
                         num_out_heads=num_out_heads, num_classes=num_classes)
    assert bool(jnp.max(jnp.abs(out - ref)) < 0.15)
    print("KERNEL_OK")
</pallas_src>

<mosaic_0001>
module attributes {stable_mosaic.version = 11 : i64} {
  func.func @_gat_conv_kernel(%arg0: i32, %arg1: memref<8x16xi8, #tpu.memory_space<vmem>>, %arg2: memref<16x32xbf16, #tpu.memory_space<vmem>>, %arg3: memref<8x32xbf16, #tpu.memory_space<vmem>>, %arg4: memref<32x32xbf16, #tpu.memory_space<vmem>>, %arg5: memref<32x8xbf16, #tpu.memory_space<vmem>>, %arg6: memref<1x32xf32, #tpu.memory_space<vmem>>, %arg7: memref<8x32xbf16, #tpu.memory_space<vmem>>) attributes {dimension_semantics = [#tpu.dimension_semantics<parallel>], iteration_bounds = array<i64: 2>, scalar_prefetch = 0 : i64, scratch_operands = 0 : i64, tpu.core_type = #tpu.core_type<tc>, window_params = [{transform_indices = @transform_0, window_bounds = array<i64: 8, 16>}, {pipeline_mode = #tpu.pipeline_mode<synchronous>, transform_indices = @transform_1, window_bounds = array<i64: 16, 32>}, {transform_indices = @transform_2, window_bounds = array<i64: 8, 32>}, {pipeline_mode = #tpu.pipeline_mode<synchronous>, transform_indices = @transform_3, window_bounds = array<i64: 32, 32>}, {pipeline_mode = #tpu.pipeline_mode<synchronous>, transform_indices = @transform_4, window_bounds = array<i64: 32, 8>}, {pipeline_mode = #tpu.pipeline_mode<synchronous>, transform_indices = @transform_5, window_bounds = array<i64: 1, 32>}, {transform_indices = @transform_6, window_bounds = array<i64: 8, 32>}]} {
    %c0 = arith.constant 0 : index
    %c0_0 = arith.constant 0 : index
    %0 = vector.load %arg2[%c0, %c0_0] : memref<16x32xbf16, #tpu.memory_space<vmem>>, vector<16x32xbf16>
    %c0_1 = arith.constant 0 : index
    %c0_2 = arith.constant 0 : index
    %1 = vector.load %arg4[%c0_1, %c0_2] : memref<32x32xbf16, #tpu.memory_space<vmem>>, vector<32x32xbf16>
    %cst = arith.constant dense<0.000000e+00> : vector<16x32xf32>
    %2 = tpu.matmul %0, %1, %cst {dimension_numbers = #tpu.dot_dimension_numbers<[1], [0], [0], [1], [0, 0, 1, 1], [], []>} : vector<16x32xbf16>, vector<32x32xbf16>, vector<16x32xf32> -> vector<16x32xf32>
    %3 = arith.truncf %2 : vector<16x32xf32> to vector<16x32xbf16>
    %c0_3 = arith.constant 0 : index
    %c0_4 = arith.constant 0 : index
    %4 = vector.load %arg5[%c0_3, %c0_4] : memref<32x8xbf16, #tpu.memory_space<vmem>>, vector<32x8xbf16>
    %cst_5 = arith.constant dense<0.000000e+00> : vector<16x8xf32>
    %5 = tpu.matmul %3, %4, %cst_5 {dimension_numbers = #tpu.dot_dimension_numbers<[1], [0], [0], [1], [0, 0, 1, 1], [], []>} : vector<16x32xbf16>, vector<32x8xbf16>, vector<16x8xf32> -> vector<16x8xf32>
    %6 = vector.extract_strided_slice %5 {offsets = [0, 0], sizes = [16, 4], strides = [1, 1]} : vector<16x8xf32> to vector<16x4xf32>
    %7 = tpu.transpose %6, [1, 0] : vector<16x4xf32> -> vector<4x16xf32>
    %c0_6 = arith.constant 0 : index
    %c0_7 = arith.constant 0 : index
    %8 = vector.load %arg3[%c0_6, %c0_7] : memref<8x32xbf16, #tpu.memory_space<vmem>>, vector<8x32xbf16>
    %c0_8 = arith.constant 0 : index
    %c0_9 = arith.constant 0 : index
    %9 = vector.load %arg4[%c0_8, %c0_9] : memref<32x32xbf16, #tpu.memory_space<vmem>>, vector<32x32xbf16>
    %cst_10 = arith.constant dense<0.000000e+00> : vector<8x32xf32>
    %10 = tpu.matmul %8, %9, %cst_10 {dimension_numbers = #tpu.dot_dimension_numbers<[1], [0], [0], [1], [0, 0, 1, 1], [], []>} : vector<8x32xbf16>, vector<32x32xbf16>, vector<8x32xf32> -> vector<8x32xf32>
    %11 = arith.truncf %10 : vector<8x32xf32> to vector<8x32xbf16>
    %c0_11 = arith.constant 0 : index
    %c0_12 = arith.constant 0 : index
    %12 = vector.load %arg5[%c0_11, %c0_12] : memref<32x8xbf16, #tpu.memory_space<vmem>>, vector<32x8xbf16>
    %cst_13 = arith.constant dense<0.000000e+00> : vector<8x8xf32>
    %13 = tpu.matmul %11, %12, %cst_13 {dimension_numbers = #tpu.dot_dimension_numbers<[1], [0], [0], [1], [0, 0, 1, 1], [], []>} : vector<8x32xbf16>, vector<32x8xbf16>, vector<8x8xf32> -> vector<8x8xf32>
    %14 = vector.extract_strided_slice %13 {offsets = [0, 4], sizes = [8, 4], strides = [1, 1]} : vector<8x8xf32> to vector<8x4xf32>
    %c0_14 = arith.constant 0 : index
    %c0_15 = arith.constant 0 : index
    %15 = vector.load %arg1[%c0_14, %c0_15] : memref<8x16xi8, #tpu.memory_space<vmem>>, vector<8x16xi8>
    %16 = vector.extract_strided_slice %14 {offsets = [0, 0], sizes = [8, 1], strides = [1, 1]} : vector<8x4xf32> to vector<8x1xf32>
    %17 = vector.extract_strided_slice %7 {offsets = [0, 0], sizes = [1, 16], strides = [1, 1]} : vector<4x16xf32> to vector<1x16xf32>
    %18 = vector.broadcast %16 : vector<8x1xf32> to vector<8x16xf32>
    %19 = vector.broadcast %17 : vector<1x16xf32> to vector<8x16xf32>
    %20 = arith.addf %18, %19 : vector<8x16xf32>
    %cst_16 = arith.constant 2.000000e-01 : f32
    %21 = vector.broadcast %cst_16 : f32 to vector<8x16xf32>
    %22 = arith.mulf %21, %20 : vector<8x16xf32>
    %23 = arith.maximumf %20, %22 : vector<8x16xf32>
    %c0_i8 = arith.constant 0 : i8
    %24 = vector.broadcast %c0_i8 : i8 to vector<8x16xi8>
    %25 = arith.cmpi ne, %15, %24 : vector<8x16xi8>
    %cst_17 = arith.constant -1.000000e+30 : f32
    %26 = vector.broadcast %cst_17 : f32 to vector<8x16xf32>
    %27 = arith.select %25, %23, %26 : vector<8x16xi1>, vector<8x16xf32>
    %cst_18 = arith.constant dense<0xFF800000> : vector<8xf32>
    %28 = vector.multi_reduction <maximumf>, %27, %cst_18 [1] : vector<8x16xf32> to vector<8xf32>
    %29 = vector.shape_cast %28 : vector<8xf32> to vector<8x1xf32>
    %30 = vector.broadcast %29 : vector<8x1xf32> to vector<8x16xf32>
    %31 = arith.subf %27, %30 : vector<8x16xf32>
    %32 = arith.truncf %31 : vector<8x16xf32> to vector<8x16xbf16>
    %33 = math.exp %32 : vector<8x16xbf16>
    %34 = arith.extf %33 : vector<8x16xbf16> to vector<8x16xf32>
    %cst_19 = arith.constant dense<0.000000e+00> : vector<8xf32>
    %35 = vector.multi_reduction <add>, %34, %cst_19 [1] : vector<8x16xf32> to vector<8xf32>
    %36 = vector.shape_cast %35 : vector<8xf32> to vector<8x1xf32>
    %37 = tpu.reciprocal %36 : vector<8x1xf32> -> vector<8x1xf32>
    %38 = vector.broadcast %37 : vector<8x1xf32> to vector<8x16xf32>
    %39 = arith.mulf %34, %38 : vector<8x16xf32>
    %40 = arith.truncf %39 : vector<8x16xf32> to vector<8x16xbf16>
    %41 = vector.extract_strided_slice %3 {offsets = [0, 0], sizes = [16, 8], strides = [1, 1]} : vector<16x32xbf16> to vector<16x8xbf16>
    %cst_20 = arith.constant dense<0.000000e+00> : vector<8x8xf32>
    %42 = tpu.matmul %40, %41, %cst_20 {dimension_numbers = #tpu.dot_dimension_numbers<[1], [0], [0], [1], [0, 0, 1, 1], [], []>} : vector<8x16xbf16>, vector<16x8xbf16>, vector<8x8xf32> -> vector<8x8xf32>
    %43 = vector.extract_strided_slice %14 {offsets = [0, 1], sizes = [8, 1], strides = [1, 1]} : vector<8x4xf32> to vector<8x1xf32>
    %44 = vector.extract_strided_slice %7 {offsets = [1, 0], sizes = [1, 16], strides = [1, 1]} : vector<4x16xf32> to vector<1x16xf32>
    %45 = vector.broadcast %43 : vector<8x1xf32> to vector<8x16xf32>
    %46 = vector.broadcast %44 : vector<1x16xf32> to vector<8x16xf32>
    %47 = arith.addf %45, %46 : vector<8x16xf32>
    %cst_21 = arith.constant 2.000000e-01 : f32
    %48 = vector.broadcast %cst_21 : f32 to vector<8x16xf32>
    %49 = arith.mulf %48, %47 : vector<8x16xf32>
    %50 = arith.maximumf %47, %49 : vector<8x16xf32>
    %c0_i8_22 = arith.constant 0 : i8
    %51 = vector.broadcast %c0_i8_22 : i8 to vector<8x16xi8>
    %52 = arith.cmpi ne, %15, %51 : vector<8x16xi8>
    %cst_23 = arith.constant -1.000000e+30 : f32
    %53 = vector.broadcast %cst_23 : f32 to vector<8x16xf32>
    %54 = arith.select %52, %50, %53 : vector<8x16xi1>, vector<8x16xf32>
    %cst_24 = arith.constant dense<0xFF800000> : vector<8xf32>
    %55 = vector.multi_reduction <maximumf>, %54, %cst_24 [1] : vector<8x16xf32> to vector<8xf32>
    %56 = vector.shape_cast %55 : vector<8xf32> to vector<8x1xf32>
    %57 = vector.broadcast %56 : vector<8x1xf32> to vector<8x16xf32>
    %58 = arith.subf %54, %57 : vector<8x16xf32>
    %59 = arith.truncf %58 : vector<8x16xf32> to vector<8x16xbf16>
    %60 = math.exp %59 : vector<8x16xbf16>
    %61 = arith.extf %60 : vector<8x16xbf16> to vector<8x16xf32>
    %cst_25 = arith.constant dense<0.000000e+00> : vector<8xf32>
    %62 = vector.multi_reduction <add>, %61, %cst_25 [1] : vector<8x16xf32> to vector<8xf32>
    %63 = vector.shape_cast %62 : vector<8xf32> to vector<8x1xf32>
    %64 = tpu.reciprocal %63 : vector<8x1xf32> -> vector<8x1xf32>
    %65 = vector.broadcast %64 : vector<8x1xf32> to vector<8x16xf32>
    %66 = arith.mulf %61, %65 : vector<8x16xf32>
    %67 = arith.truncf %66 : vector<8x16xf32> to vector<8x16xbf16>
    %68 = vector.extract_strided_slice %3 {offsets = [0, 8], sizes = [16, 8], strides = [1, 1]} : vector<16x32xbf16> to vector<16x8xbf16>
    %cst_26 = arith.constant dense<0.000000e+00> : vector<8x8xf32>
    %69 = tpu.matmul %67, %68, %cst_26 {dimension_numbers = #tpu.dot_dimension_numbers<[1], [0], [0], [1], [0, 0, 1, 1], [], []>} : vector<8x16xbf16>, vector<16x8xbf16>, vector<8x8xf32> -> vector<8x8xf32>
    %70 = vector.extract_strided_slice %14 {offsets = [0, 2], sizes = [8, 1], strides = [1, 1]} : vector<8x4xf32> to vector<8x1xf32>
    %71 = vector.extract_strided_slice %7 {offsets = [2, 0], sizes = [1, 16], strides = [1, 1]} : vector<4x16xf32> to vector<1x16xf32>
    %72 = vector.broadcast %70 : vector<8x1xf32> to vector<8x16xf32>
    %73 = vector.broadcast %71 : vector<1x16xf32> to vector<8x16xf32>
    %74 = arith.addf %72, %73 : vector<8x16xf32>
    %cst_27 = arith.constant 2.000000e-01 : f32
    %75 = vector.broadcast %cst_27 : f32 to vector<8x16xf32>
    %76 = arith.mulf %75, %74 : vector<8x16xf32>
    %77 = arith.maximumf %74, %76 : vector<8x16xf32>
    %c0_i8_28 = arith.constant 0 : i8
    %78 = vector.broadcast %c0_i8_28 : i8 to vector<8x16xi8>
    %79 = arith.cmpi ne, %15, %78 : vector<8x16xi8>
    %cst_29 = arith.constant -1.000000e+30 : f32
    %80 = vector.broadcast %cst_29 : f32 to vector<8x16xf32>
    %81 = arith.select %79, %77, %80 : vector<8x16xi1>, vector<8x16xf32>
    %cst_30 = arith.constant dense<0xFF800000> : vector<8xf32>
    %82 = vector.multi_reduction <maximumf>, %81, %cst_30 [1] : vector<8x16xf32> to vector<8xf32>
    %83 = vector.shape_cast %82 : vector<8xf32> to vector<8x1xf32>
    %84 = vector.broadcast %83 : vector<8x1xf32> to vector<8x16xf32>
    %85 = arith.subf %81, %84 : vector<8x16xf32>
    %86 = arith.truncf %85 : vector<8x16xf32> to vector<8x16xbf16>
    %87 = math.exp %86 : vector<8x16xbf16>
    %88 = arith.extf %87 : vector<8x16xbf16> to vector<8x16xf32>
    %cst_31 = arith.constant dense<0.000000e+00> : vector<8xf32>
    %89 = vector.multi_reduction <add>, %88, %cst_31 [1] : vector<8x16xf32> to vector<8xf32>
    %90 = vector.shape_cast %89 : vector<8xf32> to vector<8x1xf32>
    %91 = tpu.reciprocal %90 : vector<8x1xf32> -> vector<8x1xf32>
    %92 = vector.broadcast %91 : vector<8x1xf32> to vector<8x16xf32>
    %93 = arith.mulf %88, %92 : vector<8x16xf32>
    %94 = arith.truncf %93 : vector<8x16xf32> to vector<8x16xbf16>
    %95 = vector.extract_strided_slice %3 {offsets = [0, 16], sizes = [16, 8], strides = [1, 1]} : vector<16x32xbf16> to vector<16x8xbf16>
    %cst_32 = arith.constant dense<0.000000e+00> : vector<8x8xf32>
    %96 = tpu.matmul %94, %95, %cst_32 {dimension_numbers = #tpu.dot_dimension_numbers<[1], [0], [0], [1], [0, 0, 1, 1], [], []>} : vector<8x16xbf16>, vector<16x8xbf16>, vector<8x8xf32> -> vector<8x8xf32>
    %97 = vector.extract_strided_slice %14 {offsets = [0, 3], sizes = [8, 1], strides = [1, 1]} : vector<8x4xf32> to vector<8x1xf32>
    %98 = vector.extract_strided_slice %7 {offsets = [3, 0], sizes = [1, 16], strides = [1, 1]} : vector<4x16xf32> to vector<1x16xf32>
    %99 = vector.broadcast %97 : vector<8x1xf32> to vector<8x16xf32>
    %100 = vector.broadcast %98 : vector<1x16xf32> to vector<8x16xf32>
    %101 = arith.addf %99, %100 : vector<8x16xf32>
    %cst_33 = arith.constant 2.000000e-01 : f32
    %102 = vector.broadcast %cst_33 : f32 to vector<8x16xf32>
    %103 = arith.mulf %102, %101 : vector<8x16xf32>
    %104 = arith.maximumf %101, %103 : vector<8x16xf32>
    %c0_i8_34 = arith.constant 0 : i8
    %105 = vector.broadcast %c0_i8_34 : i8 to vector<8x16xi8>
    %106 = arith.cmpi ne, %15, %105 : vector<8x16xi8>
    %cst_35 = arith.constant -1.000000e+30 : f32
    %107 = vector.broadcast %cst_35 : f32 to vector<8x16xf32>
    %108 = arith.select %106, %104, %107 : vector<8x16xi1>, vector<8x16xf32>
    %cst_36 = arith.constant dense<0xFF800000> : vector<8xf32>
    %109 = vector.multi_reduction <maximumf>, %108, %cst_36 [1] : vector<8x16xf32> to vector<8xf32>
    %110 = vector.shape_cast %109 : vector<8xf32> to vector<8x1xf32>
    %111 = vector.broadcast %110 : vector<8x1xf32> to vector<8x16xf32>
    %112 = arith.subf %108, %111 : vector<8x16xf32>
    %113 = arith.truncf %112 : vector<8x16xf32> to vector<8x16xbf16>
    %114 = math.exp %113 : vector<8x16xbf16>
    %115 = arith.extf %114 : vector<8x16xbf16> to vector<8x16xf32>
    %cst_37 = arith.constant dense<0.000000e+00> : vector<8xf32>
    %116 = vector.multi_reduction <add>, %115, %cst_37 [1] : vector<8x16xf32> to vector<8xf32>
    %117 = vector.shape_cast %116 : vector<8xf32> to vector<8x1xf32>
    %118 = tpu.reciprocal %117 : vector<8x1xf32> -> vector<8x1xf32>
    %119 = vector.broadcast %118 : vector<8x1xf32> to vector<8x16xf32>
    %120 = arith.mulf %115, %119 : vector<8x16xf32>
    %121 = arith.truncf %120 : vector<8x16xf32> to vector<8x16xbf16>
    %122 = vector.extract_strided_slice %3 {offsets = [0, 24], sizes = [16, 8], strides = [1, 1]} : vector<16x32xbf16> to vector<16x8xbf16>
    %cst_38 = arith.constant dense<0.000000e+00> : vector<8x8xf32>
    %123 = tpu.matmul %121, %122, %cst_38 {dimension_numbers = #tpu.dot_dimension_numbers<[1], [0], [0], [1], [0, 0, 1, 1], [], []>} : vector<8x16xbf16>, vector<16x8xbf16>, vector<8x8xf32> -> vector<8x8xf32>
    %124 = tpu.concatenate %42, %69, %96, %123 in 1 : vector<8x8xf32>, vector<8x8xf32>, vector<8x8xf32>, vector<8x8xf32> -> vector<8x32xf32>
    %c0_39 = arith.constant 0 : index
    %c0_40 = arith.constant 0 : index
    %125 = vector.load %arg6[%c0_39, %c0_40] : memref<1x32xf32, #tpu.memory_space<vmem>>, vector<1x32xf32>
    %126 = vector.broadcast %125 : vector<1x32xf32> to vector<8x32xf32>
    %127 = arith.addf %124, %126 : vector<8x32xf32>
    %cst_41 = arith.constant 0.000000e+00 : f32
    %128 = vector.broadcast %cst_41 : f32 to vector<8x32xf32>
    %129 = arith.cmpf ogt, %127, %128 : vector<8x32xf32>
    %cst_42 = arith.constant 0.000000e+00 : f32
    %130 = vector.broadcast %cst_42 : f32 to vector<8x32xf32>
    %131 = arith.minimumf %127, %130 : vector<8x32xf32>
    %132 = math.exp %131 : vector<8x32xf32>
    %cst_43 = arith.constant 1.000000e+00 : f32
    %133 = vector.broadcast %cst_43 : f32 to vector<8x32xf32>
    %134 = arith.subf %132, %133 : vector<8x32xf32>
    %135 = arith.select %129, %127, %134 : vector<8x32xi1>, vector<8x32xf32>
    %136 = arith.truncf %135 : vector<8x32xf32> to vector<8x32xbf16>
    %c0_44 = arith.constant 0 : index
    %c0_45 = arith.constant 0 : index
    %137 = vector.load %arg7[%c0_44, %c0_45] : memref<8x32xbf16, #tpu.memory_space<vmem>>, vector<8x32xbf16>
    tpu.vector_store %arg7[%c0_44, %c0_45], %136 {strides = array<i32>} : memref<8x32xbf16, #tpu.memory_space<vmem>>, vector<8x32xbf16>,
    return
  }
  func.func @transform_0(%arg0: i32) -> (i32, i32) {
    %c0_i32 = arith.constant 0 : i32
    %c0_i32_0 = arith.constant 0 : i32
    return %arg0, %c0_i32 : i32, i32
  }
  func.func @transform_1(%arg0: i32) -> (i32, i32) {
    %c0_i32 = arith.constant 0 : i32
    %c0_i32_0 = arith.constant 0 : i32
    %c0_i32_1 = arith.constant 0 : i32
    return %c0_i32, %c0_i32_0 : i32, i32
  }
  func.func @transform_2(%arg0: i32) -> (i32, i32) {
    %c0_i32 = arith.constant 0 : i32
    %c0_i32_0 = arith.constant 0 : i32
    return %arg0, %c0_i32 : i32, i32
  }
  func.func @transform_3(%arg0: i32) -> (i32, i32) {
    %c0_i32 = arith.constant 0 : i32
    %c0_i32_0 = arith.constant 0 : i32
    %c0_i32_1 = arith.constant 0 : i32
    return %c0_i32, %c0_i32_0 : i32, i32
  }
  func.func @transform_4(%arg0: i32) -> (i32, i32) {
    %c0_i32 = arith.constant 0 : i32
    %c0_i32_0 = arith.constant 0 : i32
    %c0_i32_1 = arith.constant 0 : i32
    return %c0_i32, %c0_i32_0 : i32, i32
  }
  func.func @transform_5(%arg0: i32) -> (i32, i32) {
    %c0_i32 = arith.constant 0 : i32
    %c0_i32_0 = arith.constant 0 : i32
    %c0_i32_1 = arith.constant 0 : i32
    return %c0_i32, %c0_i32_0 : i32, i32
  }
  func.func @transform_6(%arg0: i32) -> (i32, i32) {
    %c0_i32 = arith.constant 0 : i32
    %c0_i32_0 = arith.constant 0 : i32
    return %arg0, %c0_i32 : i32, i32
  }
}

</mosaic_0001>

<bundles_post_ra>
// kernel: tpu_custom_call.1
= control target key start
LH: loop header
LB: loop body
LE: loop exit
PB: predicated region body
PF: predicated region fallthrough
CT: control target
= control target key end

     0   :  { %s1647_s0 = inlined_call_operand.hbm [shape: s8[16,16], index: 0, kind: input, shape index: {}]   ;;  %s1648_s1 = inlined_call_operand.vmem [shape: bf16[16,32], index: 1, kind: input, shape index: {}]   ;;  %s1649_s2 = inlined_call_operand.hbm [shape: bf16[16,32], index: 2, kind: input, shape index: {}]   ;;  %s1650_s3 = inlined_call_operand.vmem [shape: bf16[32,32], index: 3, kind: input, shape index: {}]   ;;  %s1651_s4 = inlined_call_operand.vmem [shape: bf16[32,8], index: 4, kind: input, shape index: {}]   ;;  %s1652_s5 = inlined_call_operand.vmem [shape: f32[1,32], index: 5, kind: input, shape index: {}]   ;;  %s1653_s6 = inlined_call_operand.hbm [shape: bf16[16,32], index: 6, kind: output, shape index: {}]  }
   0x1   :  { %1656 = sst [smem:[#allocation11_spill]] %s1647_s0 }
   0x2   :  { %11 = vsyncpa [#allocation3], 0 }
   0x3   :  { %13 = vsyncpa [#allocation3 + $0x1], 0 }
   0x4   :  { %14 = vsyncpa [#allocation6], 0 }
   0x5   :  { %16 = vsyncpa [#allocation6 + $0x1], 0 }
   0x6   :  { %17 = vsyncpa [#allocation4], 0 }
   0x7   :  { %19 = vsyncpa [#allocation4 + $0x1], 0  ;;  %s1369_s21 = smov 0   ;;  %s1371_s22 = smov 0  }
   0x8   :  { %s1373_s23 = smov 0   ;;  %s1375_s24 = smov 0  }
   0x9 LB: > { %s1390_s25 = sadd.s32 4294967295, %s1316_s24   ;;  %s994_s26 = sadd.s32 4294967294, %s1316_s24   ;;  %s1316_s24 = sphi %s1375_s24, %s1676_s24   ;;  %s1312_s23 = sphi %s1373_s23, %s1675_s23   ;;  %s1308_s22 = sphi %s1371_s22, %s1674_s22   ;;  %s1304_s21 = sphi %s1369_s21, %s1673_s21  }
   0xa   : > { %s1394_s27 = sadd.s32 1, %s1316_s24   ;;  %s32_s28 = sadd.s32 1, %s1312_s23 }
   0xb   : > { %s29_s29 = ssub.s32 %s1316_s24, %s1394_s27  ;;  %p39_p0 = scmp.ne.s32.totalorder %s1312_s23, %s1308_s22 }
   0xc   : > { %p30_p1 = scmp.eq.s32.totalorder %s29_s29, 0  ;;  %p40_p2 = scmp.eq.s32.totalorder %s1316_s24, 0 }
   0xd   : > { %p45_p3 = scmp.ne.s32.totalorder %s1308_s22, %s1304_s21  ;;  %p46_p4 = scmp.eq.s32.totalorder %s1390_s25, 0 }
   0xe   : > { %s1406_s30 = scalar_select %p30_p1, %s1312_s23, %s32_s28  }
   0xf   : > { %p1408_p5 = por %p40_p2, %p39_p0  ;;  %p1412_p6 = por %p46_p4, %p45_p3 }
  0x10   : > { %p179_p7 = scmp.eq.s32.totalorder %s1390_s25, 1  ;;  %p185_p8 = scmp.eq.s32.totalorder %s994_s26, 1 }
  0x11   : > { %s1658_s8 = scalar_select %p1412_p6, 1, 0 }
  0x12   : > { %p1117_p10 = scmp.lt.s32.totalorder %s1316_s24, 2  ;;  %p1419_p11 = por %p179_p7, %p39_p0 }
  0x13   : > { %p1423_p12 = por %p185_p8, %p45_p3  ;;  %s1428_s11 = sand.u32 1, %s1312_s23  }
  0x14   : > { %s1659_s9 = scalar_select %p1419_p11, 1, 0 }
  0x15   : > { %s1660_s10 = scalar_select %p1423_p12, 1, 0 }
  0x16   : > { %s998_s12 = sshll.u32 %s1316_s24, 5  ;;  %s997_s13 = sshll.u32 %s1428_s11, 1 }
  0x17   : > { %s1661_s0 = sld [smem:[#allocation11_spill]]  ;;  %s221_s17 = scalar_lea.vmem [#allocation2], %s997_s13 }
  0x18   : > { %s228_s18 = sshll.u32 %s221_s17, 4  ;;  %p1439_p13 = pnand %p1117_p10, %p1408_p5  ;;  %s1443_s18 = int_to_ptr.vmem [resolvable:$true] %s228_s18 }
  0x19   : > { %s218_s20 = scalar_lea.sflag [#allocation3], %s1428_s11 }
  0x1a   : > { %p1194_p3 = pneg %p1439_p13 }
  0x1d   : > { %s1435_s16 = scalar_lea.hbm %s1661_s0, %s998_s12  ;;  %s1197_s7 = scalar_lea.hbm %s1661_s0, 64 }
  0x1e   : > { %s1192_s26 = scalar_lea.hbm %s1435_s16, 32  ;;  %p1198_p5 = scmp.lt.s32.totalorder %s1435_s16, %s1661_s0 }
  0x1f   : > { %p1193_p2 = scmp.ne.s32.totalorder %s1435_s16, %s1192_s26  ;;  %p1199_p8 = scmp.lt.s32.totalorder %s1197_s7, %s1192_s26 }
  0x21   : > { %p1195_p4 = pnand %p1194_p3, %p1193_p2  ;;  %p1200_p10 = por %p1199_p8, %p1198_p5 }
  0x23   : > { %p1196_p7 = pneg %p1195_p4 }
  0x25   : > { %p1201_p9 = pnand %p1200_p10, %p1196_p7 }
  0x27   : > { %1204 = shalt.err (!%p1201_p9)
}
  0x28   : > { %s1205_s14 = scalar_lea.vmem %s1443_s18, 32  ;;  %s1318_s15 = smov [#allocation2]  }
  0x29   : > { %p1206_p0 = scmp.ne.s32.totalorder %s1443_s18, %s1205_s14  ;;  %s1210_s17 = sshll.u32 %s1318_s15, 4  ;;  %s1211_s17 = int_to_ptr.vmem [resolvable:$false] %s1210_s17 }
  0x2a   : > { %s1212_s28 = scalar_lea.vmem %s1211_s17, 64  ;;  %p1213_p1 = scmp.lt.s32.totalorder %s1443_s18, %s1211_s17 }
  0x2b   : > { %p1208_p2 = pnand %p1206_p0, %p1194_p3  ;;  %p1214_p12 = scmp.lt.s32.totalorder %s1212_s28, %s1205_s14 }
  0x2d   : > { %p1209_p4 = pneg %p1208_p2  ;;  %p1215_p11 = por %p1214_p12, %p1213_p1 }
  0x2f   : > { %p1216_p5 = pnand %p1215_p11, %p1209_p4 }
  0x31   : > { %1219 = shalt.err (!%p1216_p5)
}
  0x32   : > { %1109 = dma.hbm_to_vmem [thread:$0]  (!%p1439_p13), %s1435_s16, 32, %s1443_s18, %s218_s20  }
  0x33   : > { %p1663_p9 = scmp.lt.s32.totalorder %s1316_s24, 3  ;;  %p1664_p0 = scmp.ge.s32.totalorder %s1316_s24, 1 }
  0x34   : > { %s999_s29 = sshll.u32 %s1428_s11, 2  ;;  %s1000_s7 = sshll.u32 %s1316_s24, 6 }
  0x35   : > { %p1476_p7 = pnand %p1664_p0, %p1663_p9  ;;  %s1485_s14 = scalar_lea.hbm %s1649_s2, %s1000_s7 }
  0x36   : > { %s239_s15 = scalar_lea.vmem [#allocation5], %s999_s29  ;;  %s236_s16 = scalar_lea.sflag [#allocation6], %s1428_s11 }
  0x37   : > { %s1665_s26 = scalar_select %p1476_p7, 1, 0 }
  0x38   : > { %s246_s17 = sshll.u32 %s239_s15, 4  ;;  %s1220_s18 = scalar_lea.hbm %s1485_s14, 64  ;;  %s247_s17 = int_to_ptr.vmem [resolvable:$true] %s246_s17 }
  0x39   : > { %p1221_p11 = scmp.ne.s32.totalorder %s1485_s14, %s1220_s18  ;;  %s1225_s0 = scalar_lea.hbm %s1649_s2, 128 }
  0x3a   : > { %p1226_p8 = scmp.lt.s32.totalorder %s1485_s14, %s1649_s2  ;;  %p1227_p10 = scmp.lt.s32.totalorder %s1225_s0, %s1220_s18 }
  0x3b   : > { %p1223_p12 = pnand %p1221_p11, %p1194_p3 }
  0x3c   : > { %p1228_p2 = por %p1227_p10, %p1226_p8 }
  0x3d   : > { %p1224_p1 = pneg %p1223_p12 }
  0x3f   : > { %p1229_p4 = pnand %p1228_p2, %p1224_p1 }
  0x41   : > { %1232 = shalt.err (!%p1229_p4)
}
  0x42   : > { %s1233_s29 = scalar_lea.vmem %s247_s17, 64  ;;  %s1319_s11 = smov [#allocation5]  }
  0x43   : > { %p1234_p5 = scmp.ne.s32.totalorder %s247_s17, %s1233_s29  ;;  %s1238_s13 = sshll.u32 %s1319_s11, 4  ;;  %s1239_s13 = int_to_ptr.vmem [resolvable:$false] %s1238_s13 }
  0x44   : > { %s1240_s15 = scalar_lea.vmem %s1239_s13, 128  ;;  %p1241_p11 = scmp.lt.s32.totalorder %s247_s17, %s1239_s13 }
  0x45   : > { %p1236_p9 = pnand %p1234_p5, %p1194_p3  ;;  %p1242_p12 = scmp.lt.s32.totalorder %s1240_s15, %s1233_s29 }
  0x47   : > { %p1237_p0 = pneg %p1236_p9  ;;  %p1243_p6 = por %p1242_p12, %p1241_p11 }
  0x49   : > { %p1244_p7 = pnand %p1243_p6, %p1237_p0 }
  0x4b   : > { %1247 = shalt.err (!%p1244_p7)
}
  0x4c   : > { %1112 = dma.hbm_to_vmem [thread:$0]  (!%p1439_p13), %s1485_s14, 64, %s247_s17, %s236_s16  }
  0x4d   : > { %p1666_p1 = scmp.ne.s32.totalorder %s1665_s26, 0 }
  0x4e   : > { %s1509_s0 = sand.u32 (!%p1666_p1), 1, %s1308_s22   ;;  %p1667_p3 = scmp.ne.s32.totalorder (!%p1666_p1), %s1658_s8, 0 }
  0x4f   : > { %255 = sbr.rel (%p1666_p1) target bundleno = 1356 (0x54c), region = 44  ;;  %s1002_s18 = sshll.u32 (!%p1666_p1), %s1509_s0, 1 }
  0x50   : > { %s258_s20 = scalar_lea.sflag (!%p1666_p1), [#allocation3], %s1509_s0  ;;  %s1513_s28 = scalar_lea.vmem (!%p1666_p1), [#allocation2], %s1002_s18 }
  0x54   : > { %1291 = dma.done.wait (%p1667_p3), %s258_s20, 32  }
  0x55   : > { %1293 = vsyncadd (%p1667_p3), %s258_s20, 4294967264  ;;  %s1003_s19 = sshll.u32 %s1509_s0, 2  ;;  %s267_s26 = scalar_lea.sflag [#allocation6], %s1509_s0 }
  0x56   : > { %s270_s14 = scalar_lea.vmem [#allocation5], %s1003_s19 }
  0x57   : > { %1295 = dma.done.wait (%p1667_p3), %s267_s26, 64  }
  0x58   : > { %1297 = vsyncadd (%p1667_p3), %s267_s26, 4294967232  ;;  %v1320_v0 = vmov 0.0   ;;  %vm1321_vm0 = vmmov 0   ;;  %v1169_v1 = vld [vmem:[%s1650_s3 + $0x8] sm:$0xff]   ;;  %v1170_v2 = vld [vmem:[%s1650_s3] sm:$0xff]   ;;  %vm330_vm1 = vcmask 261120   ;;  %v562_v29 = vlaneseq }
  0x59   : > { %1044 = vmatprep.subr.bf16.mxu0 %v1320_v0  ;;  %1048 = vmatprep.mubr.msk.bf16.mxu0 %vm1321_vm0, %v1320_v0  ;;  %v1172_v3 = vld [vmem:[%s1651_s4 + $0x8] sm:$0xff]   ;;  %v1171_v4 = vld [vmem:[%s1648_s1] sm:$0xff]   ;;  %v1322_v17 = vmov 6   ;;  %v1323_v18 = vmov 4   ;;  %v1324_v26 = vmov 7   ;;  %v1325_v27 = vmov 5  }
  0x5a   : > { %1052 = vmatprep.subr.bf16.mxu1 %v1320_v0  ;;  %1056 = vmatprep.mubr.msk.bf16.mxu1 %vm1321_vm0, %v1320_v0  ;;  %v468_v5 = vld [vmem:[%s270_s14] sm:$0xf]  ;;  %v563_v31 = vshrl.u32 %v562_v29, 7  ;;  %v556_v32 = vld [vmem:[%s1513_s28] sm:$0x3]  ;;  %v1326_v39 = vmov 0  }
  0x5b   : > { %1045 = vmatpush3.bf16.msra.mxu0 %v1169_v1  ;;  %1053 = vmatpush3.bf16.msra.mxu1 %v1172_v3  ;;  %v1173_v6 = vld [vmem:[%s1651_s4] sm:$0xff]   ;;  %vm569_vm2 = vnez %v556_v32  ;;  %vm574_vm4 = vcmask 130048   ;;  %s1327_s20 = smov 120   ;;  %s1328_s28 = smov 104   ;;  %vm865_vm5 = vcmask 64512   ;;  %vm868_vm6 = vcmask 195584  }
  0x5c   : > { %1046 = vmatprep.subr.bf16.mxu0 %v1320_v0  ;;  %1054 = vmatprep.subr.bf16.mxu1 %v1320_v0  ;;  %v564_v35 = vsub.s32 0, %v563_v31  ;;  %v639_v36 = vsub.s32 1, %v563_v31  ;;  %v713_v37 = vsub.s32 2, %v563_v31  ;;  %v786_v38 = vsub.s32 3, %v563_v31  ;;  %s1329_s26 = smov 112   ;;  %s1330_s14 = smov 8  }
  0x5d   : > { %1166 = vset.pattern.permute.xlu1 %v1322_v17  ;;  %1164 = vset.pattern.permute.xlu0 %v1323_v18  ;;  %v570_v40 = vsel %vm569_vm2, 16843009, %v1326_v39  ;;  %s1331_s17 = smov 16   ;;  %s1332_s16 = smov 24   ;;  %vm885_vm8 = vcmask 257024  }
  0x5e   : > { %v571_v46 = vunpack.c.0.s8 %v570_v40  ;;  %s1021_s7 = sshll.u32 %s1390_s25, 6  ;;  %s303_s29 = scalar_lea.vmem [#allocation7], %s1003_s19 }
  0x5f   : > { %1047 = vmatpush3.bf16.msra.mxu0 %v1170_v2  ;;  %1055 = vmatpush3.bf16.msra.mxu1 %v1173_v6  ;;  %s901_s11 = sshll.u32 %s303_s29, 4  ;;  %s899_s18 = scalar_lea.hbm %s1653_s6, %s1021_s7  ;;  %s902_s11 = int_to_ptr.vmem [resolvable:$true] %s901_s11 }
  0x60   : > { %1060 = vmatprep.subr.bf16.mxu0 %v1320_v0  ;;  %1068 = vmatprep.subr.bf16.mxu1 %v1320_v0  ;;  %vm1574_vm3 = vcmp.ne.s32.totalorder %v571_v46, 0  ;;  %p1670_p13 = scmp.ne.s32.totalorder %s1659_s9, 0  ;;  %s1333_s25 = smov [#allocation7]  }
  0x62   : > { %1049 = vmatmul.mubr.msk.bf16.vlgmr.msra.gmra.mxu0 %vm330_vm1, %v1171_v4 }
  0x63   : > { %1061 = vmatpush3.bf16.msra.mxu0 %v1169_v1  ;;  %1064 = vmatprep.mubr.msk.bf16.mxu0 %vm1321_vm0, %v1320_v0 }
  0x64   : > { %1062 = vmatprep.subr.bf16.mxu0 %v1320_v0 }
  0x67   : > { %1063 = vmatpush3.bf16.msra.mxu0 %v1170_v2 }
  0x68   : > { %1076 = vmatprep.subr.bf16.mxu0 %v1320_v0 }
  0x6a   : > { %1065 = vmatmul.mubr.msk.bf16.vlgmr.msra.gmra.mxu0 %vm330_vm1, %v468_v5 }
  0x6b   : > { %1078 = vmatprep.mubr.msk.bf16.mxu0 %vm1321_vm0, %v1320_v0 }
 0x122   : > { %v368_v7 = vpop.f32.mrf.mxu0 }
 0x124   : > { %v1050_v8 = vpop.f32.mrf.mxu0 }
 0x126   : > { %v371_v9 = vpop.f32.mrf.mxu0 }
 0x127   : > { %v1560_v10 = vpack.c.bf16 %v371_v9, %v368_v7 }
 0x128   : > { %v1051_v11 = vpop.f32.mrf.mxu0 }
 0x129   : > { %1057 = vmatmul.mubr.msk.bf16.vlgmr.msra.gmra.mxu1 %vm330_vm1, %v1560_v10  ;;  %1077 = vmatpush3.bf16.msra.mxu0 %v1560_v10 }
 0x12a   : > { %1069 = vmatpush3.bf16.msra.mxu1 %v1172_v3  ;;  %v506_v12 = vpop.f32.mrf.mxu0  ;;  %1072 = vmatprep.mubr.msk.bf16.mxu1 %vm1321_vm0, %v1320_v0 }
 0x12b   : > { %1070 = vmatprep.subr.bf16.mxu1 %v1320_v0  ;;  %1088 = vmatprep.subr.bf16.mxu0 %v1320_v0  ;;  %v512_v14 = vpack.c.bf16 %v506_v12, %v506_v12 }
 0x12c   : > { %v1066_v13 = vpop.f32.mrf.mxu0 }
 0x12e   : > { %1071 = vmatpush3.bf16.msra.mxu1 %v1173_v6  ;;  %v509_v15 = vpop.f32.mrf.mxu0 }
 0x12f   : > { %1082 = vmatprep.subr.bf16.mxu1 %v1320_v0 }
 0x130   : > { %v1067_v16 = vpop.f32.mrf.mxu0 }
 0x131   : > { %1073 = vmatmul.mubr.msk.bf16.vlgmr.msra.gmra.mxu1 %vm330_vm1, %v512_v14 }
 0x132   : > { %1084 = vmatprep.mubr.msk.bf16.mxu1 %vm1321_vm0, %v1320_v0 }
 0x1e9   : > { %v429_v19 = vpop.f32.mrf.mxu1 }
 0x1eb   : > { %v1058_v20 = vpop.f32.mrf.mxu1 }
 0x1ed   : > { %v432_v21 = vpop.f32.mrf.mxu1 }
 0x1ef   : > { %v1059_v22 = vpop.f32.mrf.mxu1 }
 0x1f1   : > { %v550_v23 = vpop.f32.mrf.mxu1 }
 0x1f2   : > { %708 = vperm.xlu1 %1166, %v550_v23   ;;  %559 = vperm.xlu0 %1164, %v550_v23  }
 0x1f3   : > { %v1074_v24 = vpop.f32.mrf.mxu1 }
 0x1f5   : > { %v553_v25 = vpop.f32.mrf.mxu1 }
 0x1f6   : > { %1167 = vset.pattern.permute.xlu1 %v1324_v26  ;;  %1165 = vset.pattern.permute.xlu0 %v1325_v27 }
 0x1f7   : > { %781 = vperm.xlu1 %1167, %v550_v23   ;;  %634 = vperm.xlu0 %1165, %v550_v23   ;;  %v1075_v28 = vpop.f32.mrf.mxu1 }
 0x1fb   : > { %1168 = vset.pattern.permute.xlu0 %v1324_v26 }
 0x220   : > { %436 = vxpose.xlu1.b32.start [1/2] (short) (narrow) %v429_v19, 8 }
 0x224   : > { %437 = vxpose.xlu1.b32.end [2/2] (short) (narrow) %v432_v21, 8 }
 0x26d   : > { %v709_v30 = vpop.permute.xlu1 %708  ;;  %v560_v33 = vpop.permute.xlu0 %559 }
 0x272   : > { %v782_v34 = vpop.permute.xlu1 %781  ;;  %v635_v45 = vpop.permute.xlu0 %634 }
 0x29c   : > { %v452_v41 = vpop.trf.xlu1 }
 0x29d   : > { %v565_v42 = vrot.slane %v452_v41, %v564_v35  ;;  %v640_v43 = vrot.slane %v452_v41, %v639_v36  ;;  %v714_v44 = vrot.slane %v452_v41, %v713_v37  ;;  %v787_v47 = vrot.slane %v452_v41, %v786_v38 }
 0x29f   : > { %v566_v48 = vadd.f32 %v565_v42, %v560_v33  ;;  %v641_v49 = vadd.f32 %v640_v43, %v635_v45  ;;  %v715_v50 = vadd.f32 %v714_v44, %v709_v30  ;;  %v788_v57 = vadd.f32 %v787_v47, %v782_v34 }
 0x2a1   : > { %v567_v51 = vmul.f32 0.2, %v566_v48  ;;  %v642_v52 = vmul.f32 0.2, %v641_v49  ;;  %v716_v56 = vmul.f32 0.2, %v715_v50 }
 0x2a2   : > { %v789_v62 = vmul.f32 0.2, %v788_v57 }
 0x2a3   : > { %v568_v54 = vmax.f32 %v566_v48, %v567_v51  ;;  %v643_v55 = vmax.f32 %v641_v49, %v642_v52  ;;  %v717_v61 = vmax.f32 %v715_v50, %v716_v56 }
 0x2a4   : > { %v790_v2 = vmax.f32 %v788_v57, %v789_v62 }
 0x2a5   : > { %v573_v58 = vsel %vm1574_vm3, %v568_v54, -1e+30  ;;  %v644_v60 = vsel %vm1574_vm3, %v643_v55, -1e+30  ;;  %v718_v1 = vsel %vm1574_vm3, %v717_v61, -1e+30 }
 0x2a6   : > { %v575_v59 = vsel %vm574_vm4, %v573_v58, -inf  ;;  %v645_v63 = vsel %vm574_vm4, %v644_v60, -inf  ;;  %v719_v3 = vsel %vm574_vm4, %v718_v1, -inf  ;;  %v791_v4 = vsel %vm1574_vm3, %v790_v2, -1e+30 }
 0x2a7   : > { %576 = vmax.xlane.f32.xlu0 %v575_v59  ;;  %v792_v5 = vsel %vm574_vm4, %v791_v4, -inf }
 0x2ab   : > { %646 = vmax.xlane.f32.xlu0 %v645_v63 }
 0x2af   : > { %720 = vmax.xlane.f32.xlu0 %v719_v3 }
 0x2b3   : > { %793 = vmax.xlane.f32.xlu0 %v792_v5 }
 0x2c9   : > { %661 = vrot.lane.b32.xlu0 %v1560_v10, %s1327_s20  ;;  %s888_s20 = scalar_lea.sflag [#allocation4], %s1509_s0 }
 0x330   : > { %v577_v6 = vpop.xlane.xlu0 %576 }
 0x331   : > { %v578_v7 = vsub.f32 %v573_v58, %v577_v6 }
 0x333   : > { %v579_v8 = vpack.c.bf16 %v578_v7, %v578_v7 }
 0x334   : > { %v647_v9 = vpop.xlane.xlu0 %646 }
 0x335   : > { %v581_v11 = vmul.bf16 1069105081, %v579_v8  ;;  %v648_v12 = vsub.f32 %v644_v60, %v647_v9  ;;  %v1018_v8 = vld [vmem:[%s1652_s5] ss:$0 sm:$0xff] }
 0x337   : > { %1174 = vpow.bf16 %v581_v11  ;;  %v649_v13 = vpack.c.bf16 %v648_v12, %v648_v12 }
 0x338   : > { %v721_v14 = vpop.xlane.xlu0 %720 }
 0x339   : > { %v651_v15 = vmul.bf16 1069105081, %v649_v13  ;;  %v722_v16 = vsub.f32 %v718_v1, %v721_v14 }
 0x33b   : > { %1176 = vpow.bf16 %v651_v15  ;;  %v723_v17 = vpack.c.bf16 %v722_v16, %v722_v16 }
 0x33c   : > { %v794_v18 = vpop.xlane.xlu0 %793 }
 0x33d   : > { %v725_v19 = vmul.bf16 1069105081, %v723_v17  ;;  %v795_v20 = vsub.f32 %v791_v4, %v794_v18 }
 0x33f   : > { %1178 = vpow.bf16 %v725_v19  ;;  %v796_v21 = vpack.c.bf16 %v795_v20, %v795_v20 }
 0x340   : > { %v662_v22 = vpop.permute.xlu0 %661 }
 0x341   : > { %v798_v23 = vmul.bf16 1069105081, %v796_v21  ;;  %1083 = vmatpush3.bf16.msra.mxu1 %v662_v22 }
 0x342   : > { %1094 = vmatprep.subr.bf16.mxu1 %v1320_v0 }
 0x343   : > { %1180 = vpow.bf16 %v798_v23 }
 0x345   : > { %v1175_v24 = vpop.eup %1174 }
 0x346   : > { %v583_v25 = vunpack.c.l.bf16 %v1175_v24 }
 0x348   : > { %v584_v26 = vsel %vm574_vm4, %v583_v25, 0.0 }
 0x349   : > { %v1177_v27 = vpop.eup %1176  ;;  %585 = vadd.xlane.f32.xlu1 %v584_v26 }
 0x34a   : > { %v653_v28 = vunpack.c.l.bf16 %v1177_v27 }
 0x34c   : > { %v654_v29 = vsel %vm574_vm4, %v653_v28, 0.0 }
 0x34d   : > { %v1179_v30 = vpop.eup %1178  ;;  %655 = vadd.xlane.f32.xlu0 %v654_v29 }
 0x34e   : > { %v727_v31 = vunpack.c.l.bf16 %v1179_v30 }
 0x350   : > { %v728_v32 = vsel %vm574_vm4, %v727_v31, 0.0 }
 0x351   : > { %v1181_v33 = vpop.eup %1180  ;;  %729 = vadd.xlane.f32.xlu0 %v728_v32 }
 0x352   : > { %v800_v34 = vunpack.c.l.bf16 %v1181_v33 }
 0x354   : > { %v801_v35 = vsel %vm574_vm4, %v800_v34, 0.0 }
 0x355   : > { %802 = vadd.xlane.f32.xlu0 %v801_v35 }
 0x35a   : > { %807 = vrot.lane.b32.xlu1 %v1560_v10, %s1328_s28  ;;  %s1248_s28 = scalar_lea.vmem %s902_s11, 64 }
 0x35b   : > { %p1249_p6 = scmp.ne.s32.totalorder %s902_s11, %s1248_s28 }
 0x35d   : > { %p1250_p7 = pnand %p1249_p6, %p1670_p13 }
 0x35f   : > { %p1251_p8 = pneg %p1250_p7 }
 0x36b   : > { %734 = vrot.lane.b32.xlu0 %v1560_v10, %s1329_s26  ;;  %s1252_s26 = sshll.u32 %s1333_s25, 4  ;;  %s1253_s26 = int_to_ptr.vmem [resolvable:$false] %s1252_s26 }
 0x36c   : > { %s1254_s19 = scalar_lea.vmem %s1253_s26, 128  ;;  %p1255_p10 = scmp.lt.s32.totalorder %s902_s11, %s1253_s26 }
 0x36d   : > { %p1256_p2 = scmp.lt.s32.totalorder %s1254_s19, %s1248_s28 }
 0x36f   : > { %p1257_p4 = por %p1256_p2, %p1255_p10 }
 0x371   : > { %p1258_p5 = pnand %p1257_p4, %p1251_p8 }
 0x3d2   : > { %v586_v36 = vpop.xlane.xlu1 %585 }
 0x3d3   : > { %1182 = vrcp.f32 %v586_v36 }
 0x3d6   : > { %v656_v37 = vpop.xlane.xlu0 %655  ;;  %v808_v47 = vpop.permute.xlu1 %807 }
 0x3d7   : > { %1184 = vrcp.f32 %v656_v37 }
 0x3da   : > { %v730_v38 = vpop.xlane.xlu0 %729 }
 0x3db   : > { %1186 = vrcp.f32 %v730_v38 }
 0x3de   : > { %v803_v39 = vpop.xlane.xlu0 %802 }
 0x3df   : > { %1188 = vrcp.f32 %v803_v39 }
 0x3e0   : > { %v1183_v40 = vpop.eup %1182 }
 0x3e1   : > { %v588_v41 = vmul.f32 %v1183_v40, %v583_v25 }
 0x3e2   : > { %v735_v44 = vpop.permute.xlu0 %734 }
 0x3e3   : > { %v589_v42 = vpack.c.bf16 %v588_v41, %v588_v41 }
 0x3e4   : > { %v1185_v43 = vpop.eup %1184 }
 0x3e5   : > { %1079 = vmatmul.mubr.msk.bf16.vlgmr.msra.gmra.mxu0 %vm574_vm4, %v589_v42  ;;  %v658_v45 = vmul.f32 %v1185_v43, %v653_v28 }
 0x3e6   : > { %1089 = vmatpush3.bf16.msra.mxu0 %v735_v44  ;;  %1090 = vmatprep.mubr.msk.bf16.mxu0 %vm1321_vm0, %v1320_v0 }
 0x3e7   : > { %v659_v10 = vpack.c.bf16 %v658_v45, %v658_v45 }
 0x3e8   : > { %v1187_v46 = vpop.eup %1186 }
 0x3e9   : > { %1085 = vmatmul.mubr.msk.bf16.vlgmr.msra.gmra.mxu1 %vm574_vm4, %v659_v10  ;;  %v732_v48 = vmul.f32 %v1187_v46, %v727_v31 }
 0x3ea   : > { %1095 = vmatpush3.bf16.msra.mxu1 %v808_v47  ;;  %1096 = vmatprep.mubr.msk.bf16.mxu1 %vm1321_vm0, %v1320_v0 }
 0x3eb   : > { %v733_v49 = vpack.c.bf16 %v732_v48, %v732_v48 }
 0x3ec   : > { %v1189_v50 = vpop.eup %1188 }
 0x3ed   : > { %1091 = vmatmul.mubr.msk.bf16.vlgmr.msra.gmra.mxu0 %vm574_vm4, %v733_v49  ;;  %v805_v51 = vmul.f32 %v1189_v50, %v800_v34 }
 0x3ef   : > { %v806_v52 = vpack.c.bf16 %v805_v51, %v805_v51 }
 0x3f1   : > { %1097 = vmatmul.mubr.msk.bf16.vlgmr.msra.gmra.mxu1 %vm574_vm4, %v806_v52 }
 0x4a5   : > { %v627_v53 = vpop.f32.mrf.mxu0 }
 0x4a7   : > { %v1080_v54 = vpop.f32.mrf.mxu0 }
 0x4a9   : > { %v630_v55 = vpop.f32.mrf.mxu0  ;;  %v701_v56 = vpop.f32.mrf.mxu1 }
 0x4aa   : > { %854 = vrot.lane.b32.xlu0 %v701_v56, %s1330_s14 }
 0x4ab   : > { %v1081_v57 = vpop.f32.mrf.mxu0  ;;  %v1086_v58 = vpop.f32.mrf.mxu1 }
 0x4ad   : > { %v704_v59 = vpop.f32.mrf.mxu1  ;;  %v774_v60 = vpop.f32.mrf.mxu0 }
 0x4ae   : > { %858 = vrot.lane.b32.xlu0 %v774_v60, %s1331_s17 }
 0x4af   : > { %v1087_v0 = vpop.f32.mrf.mxu1  ;;  %v1092_v61 = vpop.f32.mrf.mxu0 }
 0x4b1   : > { %v777_v62 = vpop.f32.mrf.mxu0  ;;  %v847_v63 = vpop.f32.mrf.mxu1 }
 0x4b2   : > { %862 = vrot.lane.b32.xlu0 %v847_v63, %s1332_s16 }
 0x4b3   : > { %v1093_v1 = vpop.f32.mrf.mxu0  ;;  %v1098_v2 = vpop.f32.mrf.mxu1 }
 0x4b5   : > { %v850_v3 = vpop.f32.mrf.mxu1 }
 0x4b7   : > { %v1099_v4 = vpop.f32.mrf.mxu1 }
 0x51c   : > { %v855_v5 = vpop.permute.xlu0 %854 }
 0x51d   : > { %v866_v7 = vsel %vm865_vm5, %v627_v53, %v855_v5 }
 0x520   : > { %v859_v6 = vpop.permute.xlu0 %858 }
 0x521   : > { %v867_v9 = vsel %vm574_vm4, %v866_v7, %v859_v6 }
 0x524   : > { %v863_v11 = vpop.permute.xlu0 %862 }
 0x525   : > { %v869_v12 = vsel %vm868_vm6, %v867_v9, %v863_v11 }
 0x526   : > { %v877_v13 = vadd.f32 %v1018_v8, %v869_v12 }
 0x528   : > { %v879_v14 = vmin.f32 %v877_v13, 0.0  ;;  %vm878_vm7 = vcmp.gt.f32.partialorder %v877_v13, 0.0 }
 0x52a   : > { %v880_v15 = vmul.f32 1.442695, %v879_v14 }
 0x52c   : > { %1190 = vpow2.f32 %v880_v15 }
 0x539   : > { %v1191_v16 = vpop.eup %1190 }
 0x53a   : > { %v1019_v17 = vadd.f32 -1.0, %v1191_v16 }
 0x53c   : > { %v883_v18 = vsel %vm878_vm7, %v877_v13, %v1019_v17 }
 0x53d   : > { %v884_v19 = vpack.c.bf16 %v883_v18, %v883_v18 }
 0x53f   : > { %886 = vst.msk [vmem:[%s303_s29] sm:$0xf] %vm885_vm8, %v884_v19 }
 0x540   : > { %1261 = shalt.err (!%p1258_p5)
}
 0x541   : > { %s1262_s14 = scalar_lea.hbm %s899_s18, 64  ;;  %s1266_s16 = scalar_lea.hbm %s1653_s6, 128 }
 0x542   : > { %p1263_p9 = scmp.ne.s32.totalorder %s899_s18, %s1262_s14  ;;  %p1267_p12 = scmp.lt.s32.totalorder %s899_s18, %s1653_s6 }
 0x543   : > { %p1268_p1 = scmp.lt.s32.totalorder %s1266_s16, %s1262_s14 }
 0x544   : > { %p1264_p0 = pnand %p1263_p9, %p1670_p13 }
 0x545   : > { %p1269_p3 = por %p1268_p1, %p1267_p12 }
 0x546   : > { %p1265_p11 = pneg %p1264_p0 }
 0x548   : > { %p1270_p6 = pnand %p1269_p3, %p1265_p11 }
 0x54a   : > { %1273 = shalt.err (!%p1270_p6)
}
 0x54b   : > { %1104 = dma.vmem_to_hbm [thread:$0]  (%p1670_p13), %s902_s11, 64, %s899_s18, %s888_s20  }
 0x54c PF: > { %s913_s7 = sand.u32 1, %s1304_s21   ;;  %p1671_p7 = scmp.ne.s32.totalorder %s1660_s10, 0 }
 0x54d   : > { %p1672_p8 = scmp.ge.s32.totalorder %s1316_s24, 2  ;;  %s914_s29 = scalar_lea.sflag [#allocation4], %s913_s7 }
 0x54f   : > { %p1114_p10 = pnand %p1672_p8, %p1671_p7 }
 0x551   : > { %p1115_p2 = pneg %p1114_p10 }
 0x553   : > { %1299 = dma.done.wait (%p1115_p2), %s914_s29, 64  }
 0x554   : > { %1301 = vsyncadd (%p1115_p2), %s914_s29, 4294967232  ;;  %p22_p4 = scmp.ge.s32.totalorder %s1394_s27, 4   ;;  %s1673_s21 = smov %s1308_s22 }
 0x555   : > { %s1674_s22 = smov %s1312_s23  ;;  %s1675_s23 = smov %s1406_s30 }
 0x556   : > { %s1676_s24 = smov %s1394_s27  ;;  %24 = sbr.rel (!%p22_p4) target bundleno = 9 (0x9), region = 102 }
 0x55b   :  { %919 = vsyncpa [#allocation3], 1 }
 0x55c   :  { %921 = vsyncpa [#allocation3 + $0x1], 1 }
 0x55d   :  { %922 = vsyncpa [#allocation6], 1 }
 0x55e   :  { %924 = vsyncpa [#allocation6 + $0x1], 1 }
 0x55f   :  { %925 = vsyncpa [#allocation4], 1 }
 0x560   :  { %927 = vsyncpa [#allocation4 + $0x1], 1 }

</bundles_post_ra>
